<compile_context>
chip_gen: v7x
topology: tpu7x:2x2x1
jax: 0.10.0
libtpu: 0.0.40
codegen_flags: <defaults>
</compile_context>

<pallas_src>
import functools

import jax
import jax.numpy as jnp
from jax import lax
from jax.experimental import pallas as pl
from jax.experimental.pallas import tpu as pltpu

_LANES = 128


def _cossim_partial_kernel(x_ref, y_ref, o_ref, *, eps, valid_rows, rows_per_tile,
                           needs_mask):
    j = pl.program_id(1)

    @pl.when(j == 0)
    def _():
        o_ref[...] = jnp.zeros_like(o_ref)

    x = x_ref[...].astype(jnp.float32)          # (1, C, r, 128)
    y = y_ref[...].astype(jnp.float32)

    # Channel reduction over an outer dim -> pure VPU adds of lane-dense vregs.
    dot = jnp.sum(x * y, axis=1)                # (1, r, 128)
    sx = jnp.sum(x * x, axis=1)
    sy = jnp.sum(y * y, axis=1)

    eps2 = jnp.float32(eps) * jnp.float32(eps)
    # max(||x||, eps) == sqrt(max(sum(x*x), eps^2));  rsqrt on the EUP is ~free.
    inv = lax.rsqrt(jnp.maximum(sx, eps2)) * lax.rsqrt(jnp.maximum(sy, eps2))
    cos = dot * inv                             # (1, r, 128)

    if needs_mask:
        # Tail row-tile may read past the (padded) spatial extent: zero it out.
        rows = j * rows_per_tile + lax.broadcasted_iota(
            jnp.int32, (1, rows_per_tile, _LANES), 1)
        cos = jnp.where(rows < valid_rows, cos, jnp.float32(0.0))

    o_ref[...] += cos                           # lane-dense partial accumulator


def _choose_rows(c, total_rows, rows_per_tile=None,
                 vmem_budget_bytes=4 * 1024 * 1024):
    """Pick a row-tile size: multiple of 8 (or the full extent), sized so
    2 inputs x 2 pipeline buffers x (c x r x 128 x 4B) fits the VMEM budget."""
    if total_rows <= 8:
        return total_rows
    if rows_per_tile is None:
        rows_per_tile = max(8, vmem_budget_bytes // (2 * 2 * c * _LANES * 4))
    r = min(rows_per_tile, total_rows)
    return max(8, (r // 8) * 8)


def cosine_similarity_loss(output, target, *, dim=1, eps=1e-8, min_zero=True,
                           rows_per_tile=None):
    """Pallas TPU implementation of ConsinSimilarityLoss.forward (dim=1)."""
    assert output.shape == target.shape
    assert dim == 1, "kernel is specialized to the PyTorch default dim=1"
    assert output.ndim >= 2
    n, c = output.shape[0], output.shape[1]
    hw = 1
    for d in output.shape[2:]:
        hw *= d
    m = n * hw  # number of cosine terms averaged

    # (N, C, H, W, ...) -> (N, C, HW): free, contiguous reshape (no transpose).
    x = output.reshape(n, c, hw)
    y = target.reshape(n, c, hw)

    # Pad HW to a multiple of 128 only if needed; zero positions contribute 0.
    hw_pad = ((hw + _LANES - 1) // _LANES) * _LANES
    if hw_pad != hw:
        pad = [(0, 0), (0, 0), (0, hw_pad - hw)]
        x = jnp.pad(x, pad)
        y = jnp.pad(y, pad)

    total_rows = hw_pad // _LANES
    x = x.reshape(n, c, total_rows, _LANES)
    y = y.reshape(n, c, total_rows, _LANES)

    r = _choose_rows(c, total_rows, rows_per_tile)
    num_j = pl.cdiv(total_rows, r)
    needs_mask = (total_rows % r) != 0

    kernel = functools.partial(
        _cossim_partial_kernel, eps=eps, valid_rows=total_rows,
        rows_per_tile=r, needs_mask=needs_mask)

    partial = pl.pallas_call(
        kernel,
        out_shape=jax.ShapeDtypeStruct((n, r, _LANES), jnp.float32),
        grid_spec=pltpu.PrefetchScalarGridSpec(
            num_scalar_prefetch=0,
            grid=(n, num_j),
            in_specs=[
                pl.BlockSpec((1, c, r, _LANES), lambda i, j: (i, 0, j, 0)),
                pl.BlockSpec((1, c, r, _LANES), lambda i, j: (i, 0, j, 0)),
            ],
            out_specs=pl.BlockSpec((1, r, _LANES), lambda i, j: (i, 0, 0)),
        ),
        compiler_params=pltpu.CompilerParams(
            dimension_semantics=("parallel", "arbitrary")),
    )(x, y)

    # Tiny final reduction + mean + optional (1 - x) in plain XLA.
    mean = jnp.sum(partial, dtype=jnp.float32) / jnp.float32(m)
    return jnp.float32(1.0) - mean if min_zero else mean


def _reference(output, target, eps=1e-8, min_zero=True):
    x = output.astype(jnp.float32)
    y = target.astype(jnp.float32)
    dot = jnp.sum(x * y, axis=1)
    xn = jnp.maximum(jnp.sqrt(jnp.sum(x * x, axis=1)), eps)
    yn = jnp.maximum(jnp.sqrt(jnp.sum(y * y, axis=1)), eps)
    cos = jnp.mean(dot / (xn * yn))
    return (1.0 - cos) if min_zero else cos


if __name__ == "__main__":
    key = jax.random.PRNGKey(0)
    # Primary small NCHW shape + extra shapes exercising the masked row tail
    # (R=11 -> r=8, two reduction steps) and the HW->128 zero-padding path.
    shapes = [(2, 4, 16, 16), (2, 4, 16, 88), (1, 4, 10, 10)]
    for idx, shp in enumerate(shapes):
        k1, k2 = jax.random.split(jax.random.fold_in(key, idx))
        xin = jax.random.normal(k1, shp, dtype=jnp.float32)
        yin = jax.random.normal(k2, shp, dtype=jnp.float32)

        loss = cosine_similarity_loss(xin, yin, dim=1, eps=1e-8, min_zero=True)
        loss = jax.block_until_ready(loss)

        ref = _reference(xin, yin)
        assert jnp.allclose(loss, ref, atol=1e-5, rtol=1e-5), (shp, loss, ref)

    print("KERNEL_OK")
</pallas_src>

<mosaic_0001>
module attributes {stable_mosaic.version = 11 : i64} {
  func.func @_cossim_partial_kernel(%arg0: i32, %arg1: i32, %arg2: memref<1x4x2x128xf32, #tpu.memory_space<vmem>>, %arg3: memref<1x4x2x128xf32, #tpu.memory_space<vmem>>, %arg4: memref<1x2x128xf32, #tpu.memory_space<vmem>>) attributes {dimension_semantics = [#tpu.dimension_semantics<parallel>, #tpu.dimension_semantics<arbitrary>], iteration_bounds = array<i64: 2, 1>, scalar_prefetch = 0 : i64, scratch_operands = 0 : i64, tpu.core_type = #tpu.core_type<tc>, window_params = [{transform_indices = @transform_0, window_bounds = array<i64: 1, 4, 2, 128>}, {transform_indices = @transform_1, window_bounds = array<i64: 1, 4, 2, 128>}, {transform_indices = @transform_2, window_bounds = array<i64: 1, 2, 128>}]} {
    %c0_i32 = arith.constant 0 : i32
    %0 = arith.cmpi eq, %arg1, %c0_i32 : i32
    %1 = arith.extui %0 : i1 to i32
    %c0_i32_0 = arith.constant 0 : i32
    %2 = arith.cmpi ne, %1, %c0_i32_0 : i32
    scf.if %2 {
      %cst_18 = arith.constant 0.000000e+00 : f32
      %23 = vector.broadcast %cst_18 : f32 to vector<1x2x128xf32>
      %c0_19 = arith.constant 0 : index
      %c0_20 = arith.constant 0 : index
      %c0_21 = arith.constant 0 : index
      %24 = vector.load %arg4[%c0_19, %c0_20, %c0_21] : memref<1x2x128xf32, #tpu.memory_space<vmem>>, vector<1x2x128xf32>
      tpu.vector_store %arg4[%c0_19, %c0_20, %c0_21], %23 {strides = array<i32>} : memref<1x2x128xf32, #tpu.memory_space<vmem>>, vector<1x2x128xf32>,
    } else {
    }
    %c0 = arith.constant 0 : index
    %c0_1 = arith.constant 0 : index
    %c0_2 = arith.constant 0 : index
    %c0_3 = arith.constant 0 : index
    %3 = vector.load %arg2[%c0, %c0_1, %c0_2, %c0_3] : memref<1x4x2x128xf32, #tpu.memory_space<vmem>>, vector<1x4x2x128xf32>
    %c0_4 = arith.constant 0 : index
    %c0_5 = arith.constant 0 : index
    %c0_6 = arith.constant 0 : index
    %c0_7 = arith.constant 0 : index
    %4 = vector.load %arg3[%c0_4, %c0_5, %c0_6, %c0_7] : memref<1x4x2x128xf32, #tpu.memory_space<vmem>>, vector<1x4x2x128xf32>
    %5 = arith.mulf %3, %4 : vector<1x4x2x128xf32>
    %cst = arith.constant dense<0.000000e+00> : vector<1x2x128xf32>
    %6 = vector.multi_reduction <add>, %5, %cst [1] : vector<1x4x2x128xf32> to vector<1x2x128xf32>
    %7 = arith.mulf %3, %3 : vector<1x4x2x128xf32>
    %cst_8 = arith.constant dense<0.000000e+00> : vector<1x2x128xf32>
    %8 = vector.multi_reduction <add>, %7, %cst_8 [1] : vector<1x4x2x128xf32> to vector<1x2x128xf32>
    %9 = arith.mulf %4, %4 : vector<1x4x2x128xf32>
    %cst_9 = arith.constant dense<0.000000e+00> : vector<1x2x128xf32>
    %10 = vector.multi_reduction <add>, %9, %cst_9 [1] : vector<1x4x2x128xf32> to vector<1x2x128xf32>
    %cst_10 = arith.constant 9.99999993E-9 : f32
    %cst_11 = arith.constant 9.99999993E-9 : f32
    %11 = arith.mulf %cst_10, %cst_11 : f32
    %12 = vector.broadcast %11 : f32 to vector<1x2x128xf32>
    %13 = arith.maximumf %8, %12 : vector<1x2x128xf32>
    %14 = math.rsqrt %13 : vector<1x2x128xf32>
    %15 = vector.broadcast %11 : f32 to vector<1x2x128xf32>
    %16 = arith.maximumf %10, %15 : vector<1x2x128xf32>
    %17 = math.rsqrt %16 : vector<1x2x128xf32>
    %18 = arith.mulf %14, %17 : vector<1x2x128xf32>
    %19 = arith.mulf %6, %18 : vector<1x2x128xf32>
    %c0_12 = arith.constant 0 : index
    %c0_13 = arith.constant 0 : index
    %c0_14 = arith.constant 0 : index
    %20 = vector.load %arg4[%c0_12, %c0_13, %c0_14] : memref<1x2x128xf32, #tpu.memory_space<vmem>>, vector<1x2x128xf32>
    %21 = arith.addf %20, %19 : vector<1x2x128xf32>
    %c0_15 = arith.constant 0 : index
    %c0_16 = arith.constant 0 : index
    %c0_17 = arith.constant 0 : index
    %22 = vector.load %arg4[%c0_15, %c0_16, %c0_17] : memref<1x2x128xf32, #tpu.memory_space<vmem>>, vector<1x2x128xf32>
    tpu.vector_store %arg4[%c0_15, %c0_16, %c0_17], %21 {strides = array<i32>} : memref<1x2x128xf32, #tpu.memory_space<vmem>>, vector<1x2x128xf32>,
    return
  }
  func.func @transform_0(%arg0: i32, %arg1: i32) -> (i32, i32, i32, i32) {
    %c0_i32 = arith.constant 0 : i32
    %c0_i32_0 = arith.constant 0 : i32
    %c0_i32_1 = arith.constant 0 : i32
    return %arg0, %c0_i32, %arg1, %c0_i32_0 : i32, i32, i32, i32
  }
  func.func @transform_1(%arg0: i32, %arg1: i32) -> (i32, i32, i32, i32) {
    %c0_i32 = arith.constant 0 : i32
    %c0_i32_0 = arith.constant 0 : i32
    %c0_i32_1 = arith.constant 0 : i32
    return %arg0, %c0_i32, %arg1, %c0_i32_0 : i32, i32, i32, i32
  }
  func.func @transform_2(%arg0: i32, %arg1: i32) -> (i32, i32, i32) {
    %c0_i32 = arith.constant 0 : i32
    %c0_i32_0 = arith.constant 0 : i32
    %c0_i32_1 = arith.constant 0 : i32
    return %arg0, %c0_i32, %c0_i32_0 : i32, i32, i32
  }
}

</mosaic_0001>

<bundles_post_ra>
// kernel: tpu_custom_call.1
= control target key start
LH: loop header
LB: loop body
LE: loop exit
PB: predicated region body
PF: predicated region fallthrough
CT: control target
= control target key end

     0   :  { %7 = vsyncpa [#allocation3], 0  ;;  %s911_s0 = inlined_call_operand.hbm [shape: f32[2,4,2,128], index: 0, kind: input, shape index: {}]   ;;  %s912_s1 = inlined_call_operand.hbm [shape: f32[2,4,2,128], index: 1, kind: input, shape index: {}]   ;;  %s913_s2 = inlined_call_operand.hbm [shape: f32[2,2,128], index: 2, kind: output, shape index: {}]  }
   0x1   :  { %9 = vsyncpa [#allocation3 + $0x1], 0 }
   0x2   :  { %10 = vsyncpa [#allocation6], 0 }
   0x3   :  { %12 = vsyncpa [#allocation6 + $0x1], 0 }
   0x4   :  { %13 = vsyncpa [#allocation4], 0 }
   0x5   :  { %15 = vsyncpa [#allocation4 + $0x1], 0  ;;  %s658_s9 = smov 0   ;;  %s660_s10 = smov 0  }
   0x6   :  { %s662_s11 = smov 0   ;;  %s664_s12 = smov 0  }
   0x7   :  { %s666_s13 = smov 0   ;;  %s668_s14 = smov 0  }
   0x8 LB: > { %s395_s15 = sadd.s32 4294967295, %s635_s14   ;;  %s396_s16 = sadd.s32 4294967294, %s635_s14   ;;  %s635_s14 = sphi %s668_s14, %s21_s14   ;;  %s631_s13 = sphi %s666_s13, %s931_s13   ;;  %s627_s12 = sphi %s664_s12, %s930_s12   ;;  %s623_s11 = sphi %s662_s11, %s929_s11   ;;  %s619_s10 = sphi %s660_s10, %s928_s10   ;;  %s615_s9 = sphi %s658_s9, %s927_s9  }
   0x9   : > { %s33_s17 = sadd.s32 1, %s631_s13  ;;  %s42_s18 = sadd.s32 1, %s623_s11 }
   0xa   : > { %p35_p0 = scmp.ge.s32.totalorder %s33_s17, 2  ;;  %p49_p1 = scmp.ne.s32.totalorder %s623_s11, %s619_s10 }
   0xb   : > { %p50_p2 = scmp.eq.s32.totalorder %s635_s14, 0  ;;  %p55_p3 = scmp.ne.s32.totalorder %s619_s10, %s615_s9 }
   0xc   : > { %s933_s17 = smov (%p35_p0, %s33_s17), 0  ;;  %p56_p5 = scmp.eq.s32.totalorder %s395_s15, 0 }
   0xd   : > { %p699_p4 = por %p50_p2, %p49_p1  ;;  %s37_s20 = ssub.s32 %s631_s13, %s933_s17 }
   0xe   : > { %p107_p6 = scmp.eq.s32.totalorder %s395_s15, 1  ;;  %p40_p7 = scmp.eq.s32.totalorder %s37_s20, 0 }
   0xf   : > { %p705_p8 = por %p56_p5, %p55_p3  ;;  %p113_p10 = scmp.eq.s32.totalorder %s396_s16, 1 }
  0x10   : > { %p709_p9 = por %p107_p6, %p49_p1  ;;  %p432_p13 = scmp.lt.s32.totalorder %s635_s14, 2 }
  0x11   : > { %s917_s21 = scalar_select %p705_p8, 1, 0 }
  0x12   : > { %s918_s22 = scalar_select %p709_p9, 1, 0 }
  0x13   : > { %s714_s23 = scalar_select %p40_p7, %s623_s11, %s42_s18  }
  0x14   : > { %p716_p11 = por %p113_p10, %p55_p3  ;;  %s723_s25 = sand.u32 1, %s623_s11  }
  0x15   : > { %s399_s26 = sshll.u32 %s723_s25, 3  ;;  %s413_s27 = sshll.u32 %s631_s13, 7 }
  0x16   : > { %s919_s24 = scalar_select %p716_p11, 1, 0 }
  0x17   : > { %s732_s30 = scalar_lea.hbm %s911_s0, %s413_s27  ;;  %s137_s3 = scalar_lea.vmem [#allocation2], %s399_s26 }
  0x18   : > { %s145_s4 = sshll.u32 %s137_s3, 4  ;;  %p740_p0 = pnand %p432_p13, %p699_p4  ;;  %s736_s4 = int_to_ptr.vmem [resolvable:$true] %s145_s4 }
  0x19   : > { %s134_s6 = scalar_lea.sflag [#allocation3], %s723_s25  ;;  %s489_s7 = scalar_lea.hbm %s732_s30, 128 }
  0x1a   : > { %p490_p2 = scmp.ne.s32.totalorder %s732_s30, %s489_s7  ;;  %p491_p3 = pneg %p740_p0 }
  0x1b   : > { %s494_s16 = scalar_lea.hbm %s911_s0, 256  ;;  %p495_p4 = scmp.lt.u32.totalorder %s732_s30, %s911_s0 }
  0x1c   : > { %p492_p5 = pnand %p491_p3, %p490_p2  ;;  %p496_p7 = scmp.lt.u32.totalorder %s494_s16, %s489_s7 }
  0x1d   : > { %p498_p13 = scmp.lt.u32.totalorder %s489_s7, %s732_s30 }
  0x1e   : > { %p493_p6 = pneg %p492_p5  ;;  %p497_p10 = por %p496_p7, %p495_p4 }
  0x20   : > { %p499_p12 = por %p498_p13, %p497_p10 }
  0x22   : > { %p500_p1 = pnand %p499_p12, %p493_p6 }
  0x24   : > { %503 = shalt.err (!%p500_p1)
}
  0x25   : > { %s504_s20 = scalar_lea.vmem %s736_s4, 128  ;;  %s637_s28 = smov [#allocation2]  }
  0x26   : > { %p505_p2 = scmp.ne.s32.totalorder %s736_s4, %s504_s20  ;;  %s509_s29 = sshll.u32 %s637_s28, 4  ;;  %s510_s29 = int_to_ptr.vmem [resolvable:$false] %s509_s29 }
  0x27   : > { %s511_s3 = scalar_lea.vmem %s510_s29, 256  ;;  %p512_p9 = scmp.lt.s32.totalorder %s736_s4, %s510_s29 }
  0x28   : > { %p507_p5 = pnand %p505_p2, %p491_p3  ;;  %p513_p4 = scmp.lt.s32.totalorder %s511_s3, %s504_s20 }
  0x2a   : > { %p508_p11 = pneg %p507_p5  ;;  %p514_p7 = por %p513_p4, %p512_p9 }
  0x2c   : > { %p515_p10 = pnand %p514_p7, %p508_p11 }
  0x2e   : > { %518 = shalt.err (!%p515_p10)
}
  0x2f   : > { %s638_s7 = smov 32   ;;  %s639_s8 = smov 2  }
  0x30   : > { %424 = dma.hbm_to_vmem [thread:$0]  (!%p740_p0), %s732_s30, 128, %s736_s4, %s134_s6, %s638_s7, %s638_s7, %s639_s8  }
  0x31   : > { %p175_p9 = scmp.lt.s32.totalorder %s635_s14, 3  ;;  %s782_s18 = scalar_lea.hbm %s912_s1, %s413_s27 }
  0x32   : > { %p921_p11 = scmp.ge.s32.totalorder %s635_s14, 1  ;;  %s159_s20 = scalar_lea.vmem [#allocation5], %s399_s26 }
  0x33   : > { %s167_s28 = sshll.u32 %s159_s20, 4  ;;  %s156_s30 = scalar_lea.sflag [#allocation6], %s723_s25  ;;  %s792_s28 = int_to_ptr.vmem [resolvable:$true] %s167_s28 }
  0x34   : > { %p786_p12 = pnand %p921_p11, %p175_p9  ;;  %s519_s4 = scalar_lea.hbm %s782_s18, 128 }
  0x35   : > { %p520_p1 = scmp.ne.s32.totalorder %s782_s18, %s519_s4  ;;  %s524_s29 = scalar_lea.hbm %s912_s1, 256 }
  0x36   : > { %p525_p2 = scmp.lt.u32.totalorder %s782_s18, %s912_s1  ;;  %p526_p5 = scmp.lt.u32.totalorder %s524_s29, %s519_s4 }
  0x37   : > { %p522_p6 = pnand %p520_p1, %p491_p3  ;;  %p528_p7 = scmp.lt.u32.totalorder %s519_s4, %s782_s18 }
  0x38   : > { %p527_p4 = por %p526_p5, %p525_p2 }
  0x39   : > { %p523_p13 = pneg %p522_p6 }
  0x3a   : > { %p529_p10 = por %p528_p7, %p527_p4 }
  0x3c   : > { %p530_p9 = pnand %p529_p10, %p523_p13 }
  0x3e   : > { %533 = shalt.err (!%p530_p9)
}
  0x3f   : > { %s534_s26 = scalar_lea.vmem %s792_s28, 128  ;;  %s640_s16 = smov [#allocation5]  }
  0x40   : > { %p535_p11 = scmp.ne.s32.totalorder %s792_s28, %s534_s26  ;;  %s539_s20 = sshll.u32 %s640_s16, 4  ;;  %s540_s20 = int_to_ptr.vmem [resolvable:$false] %s539_s20 }
  0x41   : > { %s541_s27 = scalar_lea.vmem %s540_s20, 256  ;;  %p542_p8 = scmp.lt.s32.totalorder %s792_s28, %s540_s20 }
  0x42   : > { %p537_p1 = pnand %p535_p11, %p491_p3  ;;  %p543_p2 = scmp.lt.s32.totalorder %s541_s27, %s534_s26 }
  0x44   : > { %p538_p6 = pneg %p537_p1  ;;  %p544_p5 = por %p543_p2, %p542_p8 }
  0x46   : > { %p545_p4 = pnand %p544_p5, %p538_p6 }
  0x48   : > { %548 = shalt.err (!%p545_p4)
}
  0x49   : > { %427 = dma.hbm_to_vmem [thread:$0]  (!%p740_p0), %s782_s18, 128, %s792_s28, %s156_s30, %s638_s7, %s638_s7, %s639_s8  }
  0x4a   : > { %179 = sbr.rel (%p786_p12) target bundleno = 130 (0x82), region = 28  ;;  %s826_s4 = sand.u32 (!%p786_p12), 1, %s619_s10  }
  0x4b   : > { %s406_s6 = sshll.u32 (!%p786_p12), %s826_s4, 3  ;;  %s182_s29 = scalar_lea.sflag (!%p786_p12), [#allocation3], %s826_s4 }
  0x4c   : > { %s185_s5 = scalar_lea.vmem (!%p786_p12), [#allocation2], %s406_s6  ;;  %p923_p8 = scmp.ne.s32.totalorder (!%p786_p12), %s917_s21, 0 }
  0x51   : > { %602 = dma.done.wait (%p923_p8), %s182_s29, 128  }
  0x52   : > { %604 = vsyncadd (%p923_p8), %s182_s29, 4294967168  ;;  %s191_s25 = scalar_lea.sflag [#allocation6], %s826_s4  ;;  %s194_s7 = scalar_lea.vmem [#allocation5], %s406_s6 }
  0x53   : > { %606 = dma.done.wait (%p923_p8), %s191_s25, 128  }
  0x54   : > { %608 = vsyncadd (%p923_p8), %s191_s25, 4294967168  ;;  %s408_s8 = sshll.u32 %s826_s4, 1  ;;  %v641_v0 = vmov 0.0   ;;  %vm237_vm0 = vcmask 1041408   ;;  %v225_v1 = vld [vmem:[%s185_s5] sm:$0x3] }
  0x55   : > { %s840_s18 = scalar_lea.vmem [#allocation7], %s408_s8  ;;  %v226_v2 = vld [vmem:[%s185_s5 + $0x2] sm:$0x3]  ;;  %v227_v3 = vld [vmem:[%s185_s5 + $0x4] sm:$0x3]  ;;  %v245_v6 = vmul.f32 %v225_v1, %v225_v1  ;;  %s410_s21 = sshll.u32 %s627_s12, 5 }
  0x56   : > { %224 = vst [vmem:[%s840_s18] sm:$0x3] %v641_v0  ;;  %v228_v4 = vld [vmem:[%s185_s5 + $0x6] sm:$0x3]  ;;  %v229_v5 = vld [vmem:[%s194_s7] sm:$0x3]  ;;  %v246_v7 = vmul.f32 %v226_v2, %v226_v2  ;;  %v247_v8 = vmul.f32 %v227_v3, %v227_v3  ;;  %s290_s19 = sshll.u32 %s840_s18, 4  ;;  %s861_s3 = scalar_lea.hbm %s913_s2, %s410_s21  ;;  %s863_s19 = int_to_ptr.vmem [resolvable:$true] %s290_s19 }
  0x57   : > { %v230_v9 = vld [vmem:[%s194_s7 + $0x2] sm:$0x3]  ;;  %v248_v10 = vmul.f32 %v228_v4, %v228_v4  ;;  %v231_v11 = vld [vmem:[%s194_s7 + $0x4] sm:$0x3]  ;;  %v232_v12 = vld [vmem:[%s194_s7 + $0x6] sm:$0x3]  ;;  %v256_v15 = vmul.f32 %v229_v5, %v229_v5  ;;  %v233_v29 = vmul.f32 %v229_v5, %v225_v1 }
  0x58   : > { %v249_v13 = vsel %vm237_vm0, %v245_v6, 0.0  ;;  %v250_v14 = vsel %vm237_vm0, %v246_v7, 0.0  ;;  %v252_v17 = vsel %vm237_vm0, %v247_v8, 0.0  ;;  %v257_v20 = vmul.f32 %v230_v9, %v230_v9  ;;  %s277_s15 = scalar_lea.sflag [#allocation4], %s826_s4  ;;  %s549_s26 = scalar_lea.vmem %s863_s19, 32 }
  0x59   : > { %v251_v16 = vadd.f32 %v250_v14, %v249_v13  ;;  %v254_v18 = vsel %vm237_vm0, %v248_v10, 0.0  ;;  %v258_v21 = vmul.f32 %v231_v11, %v231_v11  ;;  %v259_v22 = vmul.f32 %v232_v12, %v232_v12  ;;  %p550_p0 = scmp.ne.s32.totalorder %s863_s19, %s549_s26  ;;  %p924_p3 = scmp.ne.s32.totalorder %s918_s22, 0 }
  0x5a   : > { %v260_v23 = vsel %vm237_vm0, %v256_v15, 0.0  ;;  %v261_v25 = vsel %vm237_vm0, %v257_v20, 0.0  ;;  %v234_v30 = vmul.f32 %v230_v9, %v226_v2  ;;  %v235_v34 = vmul.f32 %v231_v11, %v227_v3  ;;  %s642_s12 = smov [#allocation7]  }
  0x5b   : > { %v253_v19 = vadd.f32 %v252_v17, %v251_v16  ;;  %v263_v26 = vsel %vm237_vm0, %v258_v21, 0.0  ;;  %v262_v27 = vadd.f32 %v261_v25, %v260_v23  ;;  %v265_v28 = vsel %vm237_vm0, %v259_v22, 0.0  ;;  %p551_p12 = pnand %p550_p0, %p924_p3  ;;  %s553_s16 = sshll.u32 %s642_s12, 4  ;;  %s554_s16 = int_to_ptr.vmem [resolvable:$false] %s553_s16 }
  0x5c   : > { %v238_v35 = vsel %vm237_vm0, %v233_v29, 0.0  ;;  %v239_v36 = vsel %vm237_vm0, %v234_v30, 0.0  ;;  %v236_v39 = vmul.f32 %v232_v12, %v228_v4  ;;  %v241_v40 = vsel %vm237_vm0, %v235_v34, 0.0  ;;  %s555_s20 = scalar_lea.vmem %s554_s16, 64  ;;  %p556_p7 = scmp.lt.s32.totalorder %s863_s19, %s554_s16 }
  0x5d   : > { %v255_v24 = vadd.f32 %v254_v18, %v253_v19  ;;  %v264_v31 = vadd.f32 %v263_v26, %v262_v27  ;;  %v240_v38 = vadd.f32 %v239_v36, %v238_v35  ;;  %v273_v47 = vld [vmem:[%s840_s18] sm:$0x3]  ;;  %p552_p13 = pneg %p551_p12  ;;  %p557_p10 = scmp.lt.s32.totalorder %s555_s20, %s549_s26 }
  0x5e   : > { %v243_v42 = vsel %vm237_vm0, %v236_v39, 0.0 }
  0x5f   : > { %v267_v32 = vmax.f32 %v255_v24, 1e-16  ;;  %v266_v33 = vadd.f32 %v265_v28, %v264_v31  ;;  %v242_v41 = vadd.f32 %v241_v40, %v240_v38  ;;  %p558_p9 = por %p557_p10, %p556_p7 }
  0x61   : > { %485 = vrsqrt.f32 %v267_v32  ;;  %v269_v37 = vmax.f32 %v266_v33, 1e-16  ;;  %v244_v44 = vadd.f32 %v243_v42, %v242_v41  ;;  %p559_p11 = pnand %p558_p9, %p552_p13 }
  0x63   : > { %487 = vrsqrt.f32 %v269_v37 }
  0x6b   : > { %v486_v43 = vpop.eup %485 }
  0x6d   : > { %v488_v45 = vpop.eup %487 }
  0x6e   : > { %v271_v46 = vmul.f32 %v488_v45, %v486_v43 }
  0x70   : > { %v272_v48 = vmul.f32 %v271_v46, %v244_v44 }
  0x72   : > { %v274_v49 = vadd.f32 %v273_v47, %v272_v48 }
  0x74   : > { %275 = vst [vmem:[%s840_s18] sm:$0x3] %v274_v49 }
  0x75   : > { %562 = shalt.err (!%p559_p11)
}
  0x76   : > { %s563_s27 = scalar_lea.hbm %s861_s3, 32  ;;  %s567_s29 = scalar_lea.hbm %s913_s2, 64 }
  0x77   : > { %p564_p1 = scmp.ne.s32.totalorder %s861_s3, %s563_s27  ;;  %p568_p5 = scmp.lt.u32.totalorder %s861_s3, %s913_s2 }
  0x78   : > { %p569_p4 = scmp.lt.u32.totalorder %s567_s29, %s563_s27  ;;  %p571_p0 = scmp.lt.u32.totalorder %s563_s27, %s861_s3 }
  0x79   : > { %p565_p6 = pnand %p564_p1, %p924_p3 }
  0x7a   : > { %p570_p8 = por %p569_p4, %p568_p5 }
  0x7b   : > { %p566_p2 = pneg %p565_p6 }
  0x7c   : > { %p572_p12 = por %p571_p0, %p570_p8 }
  0x7e   : > { %p573_p13 = pnand %p572_p12, %p566_p2 }
  0x80   : > { %576 = shalt.err (!%p573_p13)
}
  0x81   : > { %419 = dma.vmem_to_hbm [thread:$0]  (%p924_p3), %s863_s19, 32, %s861_s3, %s277_s15  }
  0x82 PF: > { %s302_s7 = sand.u32 1, %s615_s9   ;;  %p925_p7 = scmp.ne.s32.totalorder %s919_s24, 0 }
  0x83   : > { %p926_p10 = scmp.ge.s32.totalorder %s635_s14, 2  ;;  %s303_s8 = scalar_lea.sflag [#allocation4], %s302_s7 }
  0x85   : > { %p429_p9 = pnand %p926_p10, %p925_p7 }
  0x87   : > { %610 = dma.done.wait (!%p429_p9), %s303_s8, 32  }
  0x88   : > { %612 = vsyncadd (!%p429_p9), %s303_s8, 4294967264  ;;  %s21_s14 = sadd.s32 1, %s635_s14   ;;  %s927_s9 = smov %s619_s10 }
  0x89   : > { %p18_p11 = scmp.ge.s32.totalorder %s21_s14, 4   ;;  %s928_s10 = smov %s623_s11 }
  0x8a   : > { %s929_s11 = smov %s714_s23  ;;  %s930_s12 = smov %s631_s13 }
  0x8b   : > { %s931_s13 = smov %s933_s17  ;;  %20 = sbr.rel (!%p18_p11) target bundleno = 8 (0x8), region = 90 }
  0x92   :  { %308 = vsyncpa [#allocation3], 1 }
  0x93   :  { %310 = vsyncpa [#allocation3 + $0x1], 1 }
  0x94   :  { %311 = vsyncpa [#allocation6], 1 }
  0x95   :  { %313 = vsyncpa [#allocation6 + $0x1], 1 }
  0x96   :  { %314 = vsyncpa [#allocation4], 1 }
  0x97   :  { %316 = vsyncpa [#allocation4 + $0x1], 1 }

</bundles_post_ra>
